<compile_context>
chip_gen: v5e
topology: v5e:2x2
jax: 0.10.0
libtpu: 0.0.40
codegen_flags: <defaults>
</compile_context>

<pallas_src>
import jax
import jax.numpy as jnp
from jax import lax
from jax.experimental import pallas as pl
from jax.experimental.pallas import tpu as pltpu

_LANES = 8  # one tiny in-kernel vector; well under a single vreg


def _homoscedastic_kernel(l_cls_ref, l_col_ref, l_pos_ref, lvc_ref, lvp_ref,
                          out_ref):
    # Each input ref is a (1,) f32 array resident in SMEM — no padded VMEM
    # tile, no host-side packing graph.
    l_cls = l_cls_ref[0]
    l_col = l_col_ref[0]
    l_pos = l_pos_ref[0]
    lvc = lvc_ref[0]
    lvp = lvp_ref[0]

    lane = lax.broadcasted_iota(jnp.int32, (1, _LANES), 1)

    # lanes: [L_cls, L_col, L_pos, 0, 0, 0, 0, 0]
    losses = jnp.where(lane == 0, l_cls,
             jnp.where(lane == 1, l_col,
             jnp.where(lane == 2, l_pos, 0.0)))
    # lanes: [0, lvc, lvp, 0, 0, 0, 0, 0]
    log_var = jnp.where(lane == 1, lvc,
              jnp.where(lane == 2, lvp, 0.0))
    # Compile-time constant coefficients: [1.0, 0.5, 0.5, 0, ...]
    coef = jnp.where(lane == 0, 1.0,
           jnp.where(lane < 3, 0.5, 0.0)).astype(jnp.float32)

    # One EUP push covers both exp(-log_var) terms; lane 0 yields exp(0)=1
    # which (with coef=1) passes L_cls through unweighted.
    w = jnp.exp(-log_var)

    # Lane-wise: coef * exp(-lv) * L + 0.5 * lv. Padding lanes contribute 0.
    contrib = coef * w * losses + 0.5 * log_var

    # Cross-lane reduce (XLU) to the scalar loss, stored as a (1, 1) tile.
    out_ref[...] = jnp.sum(contrib, axis=1, keepdims=True)


def _forward_pallas(L_cls, L_col, L_pos, log_var_col, log_var_pos):
    f32 = jnp.float32
    args = tuple(
        jnp.asarray(a, f32).reshape((1,))
        for a in (L_cls, L_col, L_pos, log_var_col, log_var_pos)
    )

    smem_spec = pl.BlockSpec(memory_space=pltpu.MemorySpace.SMEM)
    out = pl.pallas_call(
        _homoscedastic_kernel,
        out_shape=jax.ShapeDtypeStruct((1, 1), f32),
        grid=(),
        in_specs=[smem_spec] * 5,
        out_specs=pl.BlockSpec((1, 1), lambda: (0, 0)),
        cost_estimate=pl.CostEstimate(flops=24, transcendentals=2,
                                      bytes_accessed=24),
    )(*args)
    return out[0, 0]


@jax.custom_vjp
def homoscedastic_multi_task_loss(L_cls, L_col, L_pos, log_var_col,
                                  log_var_pos):
    """Scalar multi-task loss; differentiable w.r.t. all five inputs."""
    return _forward_pallas(L_cls, L_col, L_pos, log_var_col, log_var_pos)


def _hmtl_fwd(L_cls, L_col, L_pos, log_var_col, log_var_pos):
    out = _forward_pallas(L_cls, L_col, L_pos, log_var_col, log_var_pos)
    return out, (L_col, L_pos, log_var_col, log_var_pos)


def _hmtl_bwd(res, g):
    L_col, L_pos, lvc, lvp = res
    e_c = jnp.exp(-lvc)
    e_p = jnp.exp(-lvp)
    d_L_cls = g
    d_L_col = g * 0.5 * e_c
    d_L_pos = g * 0.5 * e_p
    d_lvc = g * (0.5 - 0.5 * e_c * L_col)
    d_lvp = g * (0.5 - 0.5 * e_p * L_pos)
    return (d_L_cls, d_L_col, d_L_pos, d_lvc, d_lvp)


homoscedastic_multi_task_loss.defvjp(_hmtl_fwd, _hmtl_bwd)


if __name__ == "__main__":
    key = jax.random.PRNGKey(0)
    k1, k2, k3 = jax.random.split(key, 3)

    # Small deterministic scalar task losses (as the module's forward implies).
    L_cls = jnp.abs(jax.random.normal(k1, (), dtype=jnp.float32))
    L_col = jnp.abs(jax.random.normal(k2, (), dtype=jnp.float32))
    L_pos = jnp.abs(jax.random.normal(k3, (), dtype=jnp.float32))

    # Parameters initialized as in __init__: torch.zeros(())
    log_var_col = jnp.zeros((), dtype=jnp.float32)
    log_var_pos = jnp.zeros((), dtype=jnp.float32)

    out = homoscedastic_multi_task_loss(L_cls, L_col, L_pos,
                                        log_var_col, log_var_pos)
    jax.block_until_ready(out)

    # Pure-JAX reference check (forward).
    def ref_fn(lvc, lvp):
        return (L_cls
                + 0.5 * jnp.exp(-lvc) * L_col + 0.5 * lvc
                + 0.5 * jnp.exp(-lvp) * L_pos + 0.5 * lvp)

    ref = ref_fn(log_var_col, log_var_pos)
    assert jnp.allclose(out, ref, rtol=1e-6, atol=1e-6), (out, ref)

    # Also exercise a non-trivial parameter point.
    lvc2 = jnp.asarray(0.3, jnp.float32)
    lvp2 = jnp.asarray(-0.7, jnp.float32)
    out2 = homoscedastic_multi_task_loss(L_cls, L_col, L_pos, lvc2, lvp2)
    jax.block_until_ready(out2)
    assert jnp.allclose(out2, ref_fn(lvc2, lvp2), rtol=1e-6, atol=1e-6)

    # Gradient check w.r.t. the learnable log-variance parameters.
    g_k = jax.grad(
        lambda lvc, lvp: homoscedastic_multi_task_loss(
            L_cls, L_col, L_pos, lvc, lvp),
        argnums=(0, 1))(log_var_col, log_var_pos)
    g_r = jax.grad(ref_fn, argnums=(0, 1))(log_var_col, log_var_pos)
    jax.block_until_ready(g_k)
    assert jnp.allclose(g_k[0], g_r[0], rtol=1e-6, atol=1e-6), (g_k[0], g_r[0])
    assert jnp.allclose(g_k[1], g_r[1], rtol=1e-6, atol=1e-6), (g_k[1], g_r[1])

    print("KERNEL_OK")
</pallas_src>

<mosaic_0001>
module attributes {stable_mosaic.version = 11 : i64} {
  func.func @_homoscedastic_kernel(%arg0: memref<1xf32, #tpu.memory_space<smem>>, %arg1: memref<1xf32, #tpu.memory_space<smem>>, %arg2: memref<1xf32, #tpu.memory_space<smem>>, %arg3: memref<1xf32, #tpu.memory_space<smem>>, %arg4: memref<1xf32, #tpu.memory_space<smem>>, %arg5: memref<1x1xf32, #tpu.memory_space<vmem>>) attributes {dimension_semantics = [], scalar_prefetch = 0 : i64, scratch_operands = 0 : i64, tpu.core_type = #tpu.core_type<tc>} {
    %c0 = arith.constant 0 : index
    %0 = memref.load %arg0[%c0] : memref<1xf32, #tpu.memory_space<smem>>
    %c0_0 = arith.constant 0 : index
    %1 = memref.load %arg1[%c0_0] : memref<1xf32, #tpu.memory_space<smem>>
    %c0_1 = arith.constant 0 : index
    %2 = memref.load %arg2[%c0_1] : memref<1xf32, #tpu.memory_space<smem>>
    %c0_2 = arith.constant 0 : index
    %3 = memref.load %arg3[%c0_2] : memref<1xf32, #tpu.memory_space<smem>>
    %c0_3 = arith.constant 0 : index
    %4 = memref.load %arg4[%c0_3] : memref<1xf32, #tpu.memory_space<smem>>
    %5 = tpu.iota {dimensions = array<i32: 1>} : vector<1x8xi32>
    %c0_i32 = arith.constant 0 : i32
    %6 = vector.broadcast %c0_i32 : i32 to vector<1x8xi32>
    %7 = arith.cmpi eq, %5, %6 : vector<1x8xi32>
    %c1_i32 = arith.constant 1 : i32
    %8 = vector.broadcast %c1_i32 : i32 to vector<1x8xi32>
    %9 = arith.cmpi eq, %5, %8 : vector<1x8xi32>
    %c2_i32 = arith.constant 2 : i32
    %10 = vector.broadcast %c2_i32 : i32 to vector<1x8xi32>
    %11 = arith.cmpi eq, %5, %10 : vector<1x8xi32>
    %cst = arith.constant 0.000000e+00 : f32
    %12 = vector.broadcast %2 : f32 to vector<1x8xf32>
    %13 = vector.broadcast %cst : f32 to vector<1x8xf32>
    %14 = arith.select %11, %12, %13 : vector<1x8xi1>, vector<1x8xf32>
    %15 = vector.broadcast %1 : f32 to vector<1x8xf32>
    %16 = arith.select %9, %15, %14 : vector<1x8xi1>, vector<1x8xf32>
    %17 = vector.broadcast %0 : f32 to vector<1x8xf32>
    %18 = arith.select %7, %17, %16 : vector<1x8xi1>, vector<1x8xf32>
    %c1_i32_4 = arith.constant 1 : i32
    %19 = vector.broadcast %c1_i32_4 : i32 to vector<1x8xi32>
    %20 = arith.cmpi eq, %5, %19 : vector<1x8xi32>
    %c2_i32_5 = arith.constant 2 : i32
    %21 = vector.broadcast %c2_i32_5 : i32 to vector<1x8xi32>
    %22 = arith.cmpi eq, %5, %21 : vector<1x8xi32>
    %cst_6 = arith.constant 0.000000e+00 : f32
    %23 = vector.broadcast %4 : f32 to vector<1x8xf32>
    %24 = vector.broadcast %cst_6 : f32 to vector<1x8xf32>
    %25 = arith.select %22, %23, %24 : vector<1x8xi1>, vector<1x8xf32>
    %26 = vector.broadcast %3 : f32 to vector<1x8xf32>
    %27 = arith.select %20, %26, %25 : vector<1x8xi1>, vector<1x8xf32>
    %c0_i32_7 = arith.constant 0 : i32
    %28 = vector.broadcast %c0_i32_7 : i32 to vector<1x8xi32>
    %29 = arith.cmpi eq, %5, %28 : vector<1x8xi32>
    %c3_i32 = arith.constant 3 : i32
    %30 = vector.broadcast %c3_i32 : i32 to vector<1x8xi32>
    %31 = arith.cmpi slt, %5, %30 : vector<1x8xi32>
    %cst_8 = arith.constant 5.000000e-01 : f32
    %cst_9 = arith.constant 0.000000e+00 : f32
    %32 = vector.broadcast %cst_8 : f32 to vector<1x8xf32>
    %33 = vector.broadcast %cst_9 : f32 to vector<1x8xf32>
    %34 = arith.select %31, %32, %33 : vector<1x8xi1>, vector<1x8xf32>
    %cst_10 = arith.constant 1.000000e+00 : f32
    %35 = vector.broadcast %cst_10 : f32 to vector<1x8xf32>
    %36 = arith.select %29, %35, %34 : vector<1x8xi1>, vector<1x8xf32>
    %cst_11 = arith.constant 0.000000e+00 : f32
    %37 = vector.broadcast %cst_11 : f32 to vector<1x8xf32>
    %38 = arith.subf %37, %27 : vector<1x8xf32>
    %39 = math.exp %38 : vector<1x8xf32>
    %40 = arith.mulf %36, %39 : vector<1x8xf32>
    %41 = arith.mulf %40, %18 : vector<1x8xf32>
    %cst_12 = arith.constant 5.000000e-01 : f32
    %42 = vector.broadcast %cst_12 : f32 to vector<1x8xf32>
    %43 = arith.mulf %42, %27 : vector<1x8xf32>
    %44 = arith.addf %41, %43 : vector<1x8xf32>
    %cst_13 = arith.constant dense<0.000000e+00> : vector<1xf32>
    %45 = vector.multi_reduction <add>, %44, %cst_13 [1] : vector<1x8xf32> to vector<1xf32>
    %46 = vector.shape_cast %45 : vector<1xf32> to vector<1x1xf32>
    %c0_14 = arith.constant 0 : index
    %c0_15 = arith.constant 0 : index
    %47 = vector.load %arg5[%c0_14, %c0_15] : memref<1x1xf32, #tpu.memory_space<vmem>>, vector<1x1xf32>
    tpu.vector_store %arg5[%c0_14, %c0_15], %46 {strides = array<i32>} : memref<1x1xf32, #tpu.memory_space<vmem>>, vector<1x1xf32>,
    return
  }
}

</mosaic_0001>

<bundles_post_ra>
// kernel: tpu_custom_call.1
= control target key start
LH: loop header
LB: loop body
LE: loop exit
PB: predicated region body
PF: predicated region fallthrough
CT: control target
= control target key end

     0   :  { %v31_v0 = vlaneseq  ;;  %s158_s0 = inlined_call_operand.<no memory space> [shape: f32[1], index: 0, kind: input, shape index: {}]   ;;  %s159_s1 = inlined_call_operand.<no memory space> [shape: f32[1], index: 1, kind: input, shape index: {}]   ;;  %s160_s2 = inlined_call_operand.<no memory space> [shape: f32[1], index: 2, kind: input, shape index: {}]   ;;  %s161_s3 = inlined_call_operand.<no memory space> [shape: f32[1], index: 3, kind: input, shape index: {}]   ;;  %s162_s4 = inlined_call_operand.<no memory space> [shape: f32[1], index: 4, kind: input, shape index: {}]   ;;  %s163_s5 = inlined_call_operand.hbm [shape: f32[1,1], index: 5, kind: output, shape index: {}]  }
   0x1   :  { %15 = vsyncpa [#allocation8], 0  ;;  %v42_v2 = vstv %s162_s4  ;;  %v44_v3 = vstv %s161_s3  ;;  %v36_v7 = vstv %s160_s2  ;;  %v38_v10 = vstv %s159_s1  ;;  %s109_s1 = smov [#allocation7]   ;;  %s69_s28 = sshll.u32 %s163_s5, 4  ;;  %s70_s28 = int_to_ptr.hbm [resolvable:$true] %s69_s28 }
   0x2   :  { %v32_v1 = vand.u32 127, %v31_v0  ;;  %v108_v11 = vmov 0.0   ;;  %v40_v14 = vstv %s158_s0  ;;  %vm56_vm4 = vcmask 64512   ;;  %s67_s2 = sshll.u32 %s109_s1, 4  ;;  %s68_s2 = int_to_ptr.vmem [resolvable:$true] %s67_s2 }
   0x3   :  { %vm60_vm5 = vcmask 0  }
   0x4   :  { %vm34_vm0 = vcmp.eq.s32.totalorder %v32_v1, 1  ;;  %vm35_vm1 = vcmp.eq.s32.totalorder %v32_v1, 2  ;;  %vm46_vm2 = vcmp.lt.s32.totalorder %v32_v1, 3  ;;  %vm33_vm3 = vcmp.eq.s32.totalorder %v32_v1, 0 }
   0x5   :  { %v43_v4 = vsel %vm35_vm1, %v42_v2, 0.0  ;;  %v37_v9 = vsel %vm35_vm1, %v36_v7, 0.0  ;;  %v47_v12 = vsel %vm46_vm2, 0.5, %v108_v11 }
   0x6   :  { %v45_v5 = vsel %vm34_vm0, %v44_v3, %v43_v4  ;;  %v39_v13 = vsel %vm34_vm0, %v38_v10, %v37_v9  ;;  %v48_v15 = vsel %vm33_vm3, 1.0, %v47_v12 }
   0x7   :  { %v49_v6 = vsub.f32 0.0, %v45_v5  ;;  %v41_v17 = vsel %vm33_vm3, %v40_v14, %v39_v13  ;;  %v54_v19 = vmul.f32 0.5, %v45_v5 }
   0x9   :  { %v50_v8 = vmul.f32 1.442695, %v49_v6 }
   0xb   :  { %80 = vpow2.f32 %v50_v8 }
  0x11   :  { %v81_v16 = vpop.eup %80 }
  0x12   :  { %v52_v18 = vmul.f32 %v81_v16, %v48_v15 }
  0x14   :  { %v53_v20 = vmul.f32 %v52_v18, %v41_v17 }
  0x16   :  { %v55_v21 = vadd.f32 %v54_v19, %v53_v20 }
  0x18   :  { %v57_v22 = vsel %vm56_vm4, %v55_v21, 0.0 }
  0x19   :  { %58 = vadd.xlane.f32.xlu0 %v57_v22 }
  0x8c   :  { %v59_v23 = vpop.xlane.xlu0 %58 }
  0x8d   :  { %61 = vst.msk [vmem:[#allocation7] sm:$0x1] %vm60_vm5, %v59_v23 }
  0x8e   :  { %72 = dma.vmem_to_hbm [thread:$0]  %s68_s2, 16, %s70_s28, [#allocation8]  }
  0x8f   :  { %106 = dma.done.wait [#allocation8], 16  }
  0x90   :  { %107 = vsyncadd [#allocation8], 4294967280 }
  0x91   :  { %77 = vsyncpa [#allocation8], 1 }

</bundles_post_ra>
